<compile_context>
chip_gen: v7x
topology: tpu7x:2x2x1
jax: 0.10.0
libtpu: 0.0.40
codegen_flags: <defaults>
</compile_context>

<pallas_src>
import functools

import jax
import jax.numpy as jnp
from jax.experimental import pallas as pl
from jax.experimental.pallas import tpu as pltpu

LANE = 128


def _pad_up(n, m=LANE):
    return ((n + m - 1) // m) * m


def _choose_row_tile(n, cap):
    """Largest divisor of n that is <= cap (leading grid-tile size over T)."""
    cap = max(1, min(n, cap))
    for c in range(cap, 0, -1):
        if n % c == 0:
            return c
    return 1


# ----------------------------------------------------------------------------
# Kernel 1: hoisted input projection  gi = x @ W_ih + b_ih  (T-tiled matmul).
# ----------------------------------------------------------------------------
def input_proj_kernel(x_ref, wih_ref, bih_ref, gi_ref):
    # x_ref:   (tt, B, Ep)   time-major embedded inputs (one T tile)
    # wih_ref: (Ep, 3Hp)     resident weights, gates ordered [r | z | n]
    # bih_ref: (1, 3Hp)
    # gi_ref:  (tt, B, 3Hp)
    tt, B, Ep = x_ref.shape
    G = wih_ref.shape[1]
    x = x_ref[...].reshape(tt * B, Ep)
    gi = jnp.dot(x, wih_ref[...], preferred_element_type=jnp.float32) + bih_ref[...]
    gi_ref[...] = gi.reshape(tt, B, G)


# ----------------------------------------------------------------------------
# Kernel 2: GRU recurrence over a grid of T; only gh = h @ W_hh per step.
# ----------------------------------------------------------------------------
def gru_recurrence_kernel(gi_ref, whh_ref, bhh_ref, enc_ref, h_scr):
    # gi_ref:  (1, B, 3Hp)  precomputed input gates for timestep t
    # whh_ref: (Hp, 3Hp)    resident hidden->gates weights
    # bhh_ref: (1, 3Hp)
    # enc_ref: (1, B, Hp)   hidden state output for timestep t
    # h_scr:   (B, Hp)      persistent VMEM scratch carrying h across the grid
    Hp = h_scr.shape[1]

    @pl.when(pl.program_id(0) == 0)
    def _init():
        h_scr[...] = jnp.zeros_like(h_scr)  # PyTorch default h0 = 0

    h_prev = h_scr[...]
    gi = gi_ref[0]                                             # (B, 3Hp)
    gh = jnp.dot(h_prev, whh_ref[...],
                 preferred_element_type=jnp.float32) + bhh_ref[...]
    # Lane-aligned gate slabs (Hp is a multiple of 128).
    r = jax.nn.sigmoid(gi[:, 0 * Hp:1 * Hp] + gh[:, 0 * Hp:1 * Hp])
    z = jax.nn.sigmoid(gi[:, 1 * Hp:2 * Hp] + gh[:, 1 * Hp:2 * Hp])
    n = jnp.tanh(gi[:, 2 * Hp:3 * Hp] + r * gh[:, 2 * Hp:3 * Hp])
    h_new = (1.0 - z) * n + z * h_prev
    h_scr[...] = h_new
    enc_ref[0] = h_new.astype(enc_ref.dtype)


# ----------------------------------------------------------------------------
# Kernel 3: remove_last_item (zero-mask t >= len-1) + output Linear, tiled
#           over (T row tiles, V column tiles) with a lane-dense output block.
# ----------------------------------------------------------------------------
def mask_proj_kernel(len_ref, enc_ref, wout_ref, bout_ref, out_ref):
    # len_ref:  (1, B) int32 sequence lengths (resident)
    # enc_ref:  (tt, B, Hp)
    # wout_ref: (Hp, tv), bout_ref: (1, tv)
    # out_ref:  (tt, B, tv)
    tt, B, Hp = enc_ref.shape
    tv = wout_ref.shape[1]
    t0 = pl.program_id(0) * tt
    t_idx = t0 + jax.lax.broadcasted_iota(jnp.int32, (tt, B), 0)   # (tt, B)
    keep = (t_idx < (len_ref[...] - 1)).astype(enc_ref.dtype)      # drop last valid step
    masked = enc_ref[...] * keep[:, :, None]                       # (tt, B, Hp)
    flat = masked.reshape(tt * B, Hp)
    logits = jnp.dot(flat, wout_ref[...],
                     preferred_element_type=jnp.float32) + bout_ref[...]
    out_ref[...] = logits.reshape(tt, B, tv).astype(out_ref.dtype)


# ----------------------------------------------------------------------------
# pallas_call wrappers
# ----------------------------------------------------------------------------
def _gi_projection(x_tm, w_ih, b_ih):
    T, B, Ep = x_tm.shape
    G = w_ih.shape[1]
    tt = _choose_row_tile(T, max(1, 128 // B))
    return pl.pallas_call(
        input_proj_kernel,
        out_shape=jax.ShapeDtypeStruct((T, B, G), jnp.float32),
        grid_spec=pltpu.PrefetchScalarGridSpec(
            num_scalar_prefetch=0,
            grid=(T // tt,),
            in_specs=[
                pl.BlockSpec((tt, B, Ep), lambda i: (i, 0, 0)),
                pl.BlockSpec((Ep, G), lambda i: (0, 0)),
                pl.BlockSpec((1, G), lambda i: (0, 0)),
            ],
            out_specs=pl.BlockSpec((tt, B, G), lambda i: (i, 0, 0)),
        ),
        compiler_params=pltpu.CompilerParams(dimension_semantics=("parallel",)),
    )(x_tm, w_ih, b_ih)


def _gru_recurrence(gi_tm, w_hh, b_hh):
    T, B, G = gi_tm.shape
    Hp = w_hh.shape[0]
    return pl.pallas_call(
        gru_recurrence_kernel,
        out_shape=jax.ShapeDtypeStruct((T, B, Hp), jnp.float32),
        grid_spec=pltpu.PrefetchScalarGridSpec(
            num_scalar_prefetch=0,
            grid=(T,),
            in_specs=[
                pl.BlockSpec((1, B, G), lambda t: (t, 0, 0)),
                pl.BlockSpec((Hp, G), lambda t: (0, 0)),
                pl.BlockSpec((1, G), lambda t: (0, 0)),
            ],
            out_specs=pl.BlockSpec((1, B, Hp), lambda t: (t, 0, 0)),
            scratch_shapes=[pltpu.VMEM((B, Hp), jnp.float32)],
        ),
        # Sequential carry through the VMEM scratch -> reduction-like axis.
        compiler_params=pltpu.CompilerParams(dimension_semantics=("arbitrary",)),
    )(gi_tm, w_hh, b_hh)


def _mask_projection(lens_2d, enc_tm, w_out, b_out):
    T, B, Hp = enc_tm.shape
    Vp = w_out.shape[1]
    tt = _choose_row_tile(T, max(1, 128 // B))
    tv = min(Vp, 512)
    if Vp % tv != 0:
        tv = LANE
    return pl.pallas_call(
        mask_proj_kernel,
        out_shape=jax.ShapeDtypeStruct((T, B, Vp), jnp.float32),
        grid_spec=pltpu.PrefetchScalarGridSpec(
            num_scalar_prefetch=0,
            grid=(T // tt, Vp // tv),
            in_specs=[
                pl.BlockSpec((1, B), lambda i, j: (0, 0)),
                pl.BlockSpec((tt, B, Hp), lambda i, j: (i, 0, 0)),
                pl.BlockSpec((Hp, tv), lambda i, j: (0, j)),
                pl.BlockSpec((1, tv), lambda i, j: (0, j)),
            ],
            out_specs=pl.BlockSpec((tt, B, tv), lambda i, j: (i, 0, j)),
        ),
        compiler_params=pltpu.CompilerParams(
            dimension_semantics=("parallel", "parallel")),
    )(lens_2d, enc_tm, w_out, b_out)


def _run_direction(emb_tm, lens_2d, dp):
    """One SplitRNNModelWarpper branch: GRU -> mask last step -> Linear."""
    gi = _gi_projection(emb_tm, dp["w_ih"], dp["b_ih"])          # (T, B, 3Hp)
    enc = _gru_recurrence(gi, dp["w_hh"], dp["b_hh"])            # (T, B, Hp)
    return _mask_projection(lens_2d, enc, dp["w_out"], dp["b_out"])  # (T, B, Vp)


# ----------------------------------------------------------------------------
# JAX glue: length-dependent sequence reversal (reverse_tensor) and embedding.
# ----------------------------------------------------------------------------
def _reverse_ids(ids, lengths):
    # Reverse the first lengths[b] tokens of each row, keep padding in place.
    T = ids.shape[1]
    t = jnp.arange(T, dtype=jnp.int32)[None, :]
    L = lengths[:, None]
    src = jnp.where(t < L, L - 1 - t, t)
    return jnp.take_along_axis(ids, src, axis=1)


def _reverse_seq(x, lengths):
    # x: (B, T, V); reverse the first lengths[b] timesteps of each row.
    T = x.shape[1]
    t = jnp.arange(T, dtype=jnp.int32)[None, :]
    L = lengths[:, None]
    src = jnp.where(t < L, L - 1 - t, t)
    return jnp.take_along_axis(x, src[:, :, None], axis=1)


@functools.partial(jax.jit, static_argnums=(3,))
def sensibility_birnn_forward(input_seq, input_length, params, vocab_size):
    """input_seq: (B, T) int32 ids; input_length: (B,) int32 ->
       (forward_output, reversed_backward_output), each (B, T, V) float32."""
    lengths = input_length.astype(jnp.int32)
    bwd_ids = _reverse_ids(input_seq.astype(jnp.int32), lengths)

    # Shared embedding (padding_idx=0 row is zero).  Gather directly into
    # time-major layout: only the small (B, T) id matrix is transposed.
    emb_f = params["embedding"][input_seq.astype(jnp.int32).T]   # (T, B, Ep)
    emb_b = params["embedding"][bwd_ids.T]                       # (T, B, Ep)

    lens_2d = lengths.reshape(1, -1)                             # (1, B)
    logits_f = _run_direction(emb_f, lens_2d, params["fwd"])     # (T, B, Vp)
    logits_b = _run_direction(emb_b, lens_2d, params["bwd"])     # (T, B, Vp)

    out_f = jnp.transpose(logits_f[:, :, :vocab_size], (1, 0, 2))    # (B, T, V)
    out_b = jnp.transpose(logits_b[:, :, :vocab_size], (1, 0, 2))    # (B, T, V)
    out_b_rev = _reverse_seq(out_b, lengths - 1)
    return out_f, out_b_rev


# ----------------------------------------------------------------------------
# Deterministic synthetic params: unpadded (reference) + padded (kernels).
# ----------------------------------------------------------------------------
def init_reference_params(key, vocab, emb_dim, hidden):
    ks = jax.random.split(key, 13)
    s = 0.1

    def dir_params(k):
        return {
            "w_ih": jax.random.normal(k[0], (emb_dim, 3 * hidden), jnp.float32) * s,
            "w_hh": jax.random.normal(k[1], (hidden, 3 * hidden), jnp.float32) * s,
            "b_ih": jax.random.normal(k[2], (1, 3 * hidden), jnp.float32) * s,
            "b_hh": jax.random.normal(k[3], (1, 3 * hidden), jnp.float32) * s,
            "w_out": jax.random.normal(k[4], (hidden, vocab), jnp.float32) * s,
            "b_out": jax.random.normal(k[5], (1, vocab), jnp.float32) * s,
        }

    emb = jax.random.normal(ks[0], (vocab, emb_dim), jnp.float32) * s
    emb = emb.at[0].set(0.0)  # nn.Embedding(padding_idx=0)
    return {"embedding": emb, "fwd": dir_params(ks[1:7]), "bwd": dir_params(ks[7:13])}


def pad_params(ref_params):
    emb = ref_params["embedding"]
    E = emb.shape[1]
    H = ref_params["fwd"]["w_hh"].shape[0]
    V = ref_params["fwd"]["w_out"].shape[1]
    Ep, Hp, Vp = _pad_up(E), _pad_up(H), _pad_up(V)

    def pad_gate_cols(w, rows_to):
        rows = w.shape[0]
        gates = [w[:, g * H:(g + 1) * H] for g in range(3)]
        gates = [jnp.pad(g, ((0, rows_to - rows), (0, Hp - H))) for g in gates]
        return jnp.concatenate(gates, axis=1)

    def pad_dir(p):
        return {
            "w_ih": pad_gate_cols(p["w_ih"], Ep),
            "w_hh": pad_gate_cols(p["w_hh"], Hp),
            "b_ih": pad_gate_cols(p["b_ih"], 1),
            "b_hh": pad_gate_cols(p["b_hh"], 1),
            "w_out": jnp.pad(p["w_out"], ((0, Hp - H), (0, Vp - V))),
            "b_out": jnp.pad(p["b_out"], ((0, 0), (0, Vp - V))),
        }

    return {
        "embedding": jnp.pad(emb, ((0, 0), (0, Ep - E))),
        "fwd": pad_dir(ref_params["fwd"]),
        "bwd": pad_dir(ref_params["bwd"]),
    }


# Pure-JAX reference (same semantics, unpadded) used only for correctness check.
def reference_forward(input_seq, input_length, rp):
    lengths = input_length.astype(jnp.int32)

    def gru_branch(emb, p):  # emb: (B, T, E)
        B, T, _ = emb.shape
        H = p["w_hh"].shape[0]

        def cell(h, x_t):
            gi = x_t @ p["w_ih"] + p["b_ih"]
            gh = h @ p["w_hh"] + p["b_hh"]
            r = jax.nn.sigmoid(gi[:, :H] + gh[:, :H])
            z = jax.nn.sigmoid(gi[:, H:2 * H] + gh[:, H:2 * H])
            n = jnp.tanh(gi[:, 2 * H:] + r * gh[:, 2 * H:])
            h_new = (1.0 - z) * n + z * h
            return h_new, h_new

        _, outs = jax.lax.scan(cell, jnp.zeros((B, H), jnp.float32),
                               jnp.transpose(emb, (1, 0, 2)))
        enc = jnp.transpose(outs, (1, 0, 2))
        t = jnp.arange(T)[None, :]
        keep = (t < (lengths[:, None] - 1)).astype(jnp.float32)
        return (enc * keep[:, :, None]) @ p["w_out"] + p["b_out"]

    bwd_ids = _reverse_ids(input_seq.astype(jnp.int32), lengths)
    emb_f = rp["embedding"][input_seq]
    emb_b = rp["embedding"][bwd_ids]
    out_f = gru_branch(emb_f, rp["fwd"])
    out_b = gru_branch(emb_b, rp["bwd"])
    return out_f, _reverse_seq(out_b, lengths - 1)


if __name__ == "__main__":
    VOCAB, EMB, HIDDEN, B, T = 16, 32, 32, 2, 8
    key = jax.random.PRNGKey(0)
    k_params, k_seq = jax.random.split(key)

    ref_params = init_reference_params(k_params, VOCAB, EMB, HIDDEN)
    params = pad_params(ref_params)

    input_seq = jax.random.randint(k_seq, (B, T), 0, VOCAB, dtype=jnp.int32)
    input_length = jnp.array([T, 5], dtype=jnp.int32)

    out_f, out_b = sensibility_birnn_forward(input_seq, input_length, params, VOCAB)
    out_f, out_b = jax.block_until_ready((out_f, out_b))

    ref_f, ref_b = reference_forward(input_seq, input_length, ref_params)
    assert out_f.shape == (B, T, VOCAB) and out_b.shape == (B, T, VOCAB)
    assert bool(jnp.allclose(out_f, ref_f, atol=1e-5, rtol=1e-5)), "fwd mismatch"
    assert bool(jnp.allclose(out_b, ref_b, atol=1e-5, rtol=1e-5)), "bwd mismatch"
    print("KERNEL_OK")
</pallas_src>

<mosaic_0001>
module attributes {stable_mosaic.version = 11 : i64} {
  func.func @gru_recurrence_kernel(%arg0: i32, %arg1: memref<1x2x384xf32, #tpu.memory_space<vmem>>, %arg2: memref<128x384xf32, #tpu.memory_space<vmem>>, %arg3: memref<1x384xf32, #tpu.memory_space<vmem>>, %arg4: memref<1x2x128xf32, #tpu.memory_space<vmem>>, %arg5: memref<2x128xf32, #tpu.memory_space<vmem>>) attributes {dimension_semantics = [#tpu.dimension_semantics<arbitrary>], iteration_bounds = array<i64: 8>, scalar_prefetch = 0 : i64, scratch_operands = 1 : i64, tpu.core_type = #tpu.core_type<tc>, window_params = [{transform_indices = @transform_0, window_bounds = array<i64: 1, 2, 384>}, {pipeline_mode = #tpu.pipeline_mode<synchronous>, transform_indices = @transform_1, window_bounds = array<i64: 128, 384>}, {pipeline_mode = #tpu.pipeline_mode<synchronous>, transform_indices = @transform_2, window_bounds = array<i64: 1, 384>}, {transform_indices = @transform_3, window_bounds = array<i64: 1, 2, 128>}]} {
    %c0_i32 = arith.constant 0 : i32
    %0 = arith.cmpi eq, %arg0, %c0_i32 : i32
    %1 = arith.extui %0 : i1 to i32
    %c0_i32_0 = arith.constant 0 : i32
    %2 = arith.cmpi ne, %1, %c0_i32_0 : i32
    scf.if %2 {
      %cst_17 = arith.constant 0.000000e+00 : f32
      %41 = vector.broadcast %cst_17 : f32 to vector<2x128xf32>
      %c0_18 = arith.constant 0 : index
      %c0_19 = arith.constant 0 : index
      %42 = vector.load %arg5[%c0_18, %c0_19] : memref<2x128xf32, #tpu.memory_space<vmem>>, vector<2x128xf32>
      tpu.vector_store %arg5[%c0_18, %c0_19], %41 {strides = array<i32>} : memref<2x128xf32, #tpu.memory_space<vmem>>, vector<2x128xf32>,
    } else {
    }
    %c0 = arith.constant 0 : index
    %c0_1 = arith.constant 0 : index
    %3 = vector.load %arg5[%c0, %c0_1] : memref<2x128xf32, #tpu.memory_space<vmem>>, vector<2x128xf32>
    %c0_2 = arith.constant 0 : index
    %c0_3 = arith.constant 0 : index
    %c0_4 = arith.constant 0 : index
    %4 = vector.load %arg1[%c0_2, %c0_3, %c0_4] : memref<1x2x384xf32, #tpu.memory_space<vmem>>, vector<1x2x384xf32>
    %5 = vector.shape_cast %4 : vector<1x2x384xf32> to vector<2x384xf32>
    %c0_5 = arith.constant 0 : index
    %c0_6 = arith.constant 0 : index
    %6 = vector.load %arg2[%c0_5, %c0_6] : memref<128x384xf32, #tpu.memory_space<vmem>>, vector<128x384xf32>
    %cst = arith.constant dense<0.000000e+00> : vector<2x384xf32>
    %7 = tpu.matmul %3, %6, %cst {dimension_numbers = #tpu.dot_dimension_numbers<[1], [0], [0], [1], [0, 0, 1, 1], [], []>} : vector<2x128xf32>, vector<128x384xf32>, vector<2x384xf32> -> vector<2x384xf32>
    %c0_7 = arith.constant 0 : index
    %c0_8 = arith.constant 0 : index
    %8 = vector.load %arg3[%c0_7, %c0_8] : memref<1x384xf32, #tpu.memory_space<vmem>>, vector<1x384xf32>
    %9 = vector.broadcast %8 : vector<1x384xf32> to vector<2x384xf32>
    %10 = arith.addf %7, %9 : vector<2x384xf32>
    %11 = vector.extract_strided_slice %5 {offsets = [0, 0], sizes = [2, 128], strides = [1, 1]} : vector<2x384xf32> to vector<2x128xf32>
    %12 = vector.extract_strided_slice %10 {offsets = [0, 0], sizes = [2, 128], strides = [1, 1]} : vector<2x384xf32> to vector<2x128xf32>
    %13 = arith.addf %11, %12 : vector<2x128xf32>
    %14 = arith.negf %13 : vector<2x128xf32>
    %15 = math.exp %14 : vector<2x128xf32>
    %cst_9 = arith.constant 1.000000e+00 : f32
    %16 = vector.broadcast %cst_9 : f32 to vector<2x128xf32>
    %17 = arith.addf %16, %15 : vector<2x128xf32>
    %18 = arith.divf %16, %17 : vector<2x128xf32>
    %19 = vector.extract_strided_slice %5 {offsets = [0, 128], sizes = [2, 128], strides = [1, 1]} : vector<2x384xf32> to vector<2x128xf32>
    %20 = vector.extract_strided_slice %10 {offsets = [0, 128], sizes = [2, 128], strides = [1, 1]} : vector<2x384xf32> to vector<2x128xf32>
    %21 = arith.addf %19, %20 : vector<2x128xf32>
    %22 = arith.negf %21 : vector<2x128xf32>
    %23 = math.exp %22 : vector<2x128xf32>
    %cst_10 = arith.constant 1.000000e+00 : f32
    %24 = vector.broadcast %cst_10 : f32 to vector<2x128xf32>
    %25 = arith.addf %24, %23 : vector<2x128xf32>
    %26 = arith.divf %24, %25 : vector<2x128xf32>
    %27 = vector.extract_strided_slice %5 {offsets = [0, 256], sizes = [2, 128], strides = [1, 1]} : vector<2x384xf32> to vector<2x128xf32>
    %28 = vector.extract_strided_slice %10 {offsets = [0, 256], sizes = [2, 128], strides = [1, 1]} : vector<2x384xf32> to vector<2x128xf32>
    %29 = arith.mulf %18, %28 : vector<2x128xf32>
    %30 = arith.addf %27, %29 : vector<2x128xf32>
    %31 = math.tanh %30 : vector<2x128xf32>
    %cst_11 = arith.constant 1.000000e+00 : f32
    %32 = vector.broadcast %cst_11 : f32 to vector<2x128xf32>
    %33 = arith.subf %32, %26 : vector<2x128xf32>
    %34 = arith.mulf %33, %31 : vector<2x128xf32>
    %35 = arith.mulf %26, %3 : vector<2x128xf32>
    %36 = arith.addf %34, %35 : vector<2x128xf32>
    %c0_12 = arith.constant 0 : index
    %c0_13 = arith.constant 0 : index
    %37 = vector.load %arg5[%c0_12, %c0_13] : memref<2x128xf32, #tpu.memory_space<vmem>>, vector<2x128xf32>
    tpu.vector_store %arg5[%c0_12, %c0_13], %36 {strides = array<i32>} : memref<2x128xf32, #tpu.memory_space<vmem>>, vector<2x128xf32>,
    %c0_14 = arith.constant 0 : index
    %c0_15 = arith.constant 0 : index
    %c0_16 = arith.constant 0 : index
    %38 = vector.load %arg4[%c0_14, %c0_15, %c0_16] : memref<1x2x128xf32, #tpu.memory_space<vmem>>, vector<1x2x128xf32>
    %39 = vector.shape_cast %38 : vector<1x2x128xf32> to vector<2x128xf32>
    %40 = vector.shape_cast %36 : vector<2x128xf32> to vector<1x2x128xf32>
    tpu.vector_store %arg4[%c0_14, %c0_15, %c0_16], %40 {strides = array<i32>} : memref<1x2x128xf32, #tpu.memory_space<vmem>>, vector<1x2x128xf32>,
    return
  }
  func.func @transform_0(%arg0: i32) -> (i32, i32, i32) {
    %c0_i32 = arith.constant 0 : i32
    %c0_i32_0 = arith.constant 0 : i32
    %c0_i32_1 = arith.constant 0 : i32
    return %arg0, %c0_i32, %c0_i32_0 : i32, i32, i32
  }
  func.func @transform_1(%arg0: i32) -> (i32, i32) {
    %c0_i32 = arith.constant 0 : i32
    %c0_i32_0 = arith.constant 0 : i32
    %c0_i32_1 = arith.constant 0 : i32
    return %c0_i32, %c0_i32_0 : i32, i32
  }
  func.func @transform_2(%arg0: i32) -> (i32, i32) {
    %c0_i32 = arith.constant 0 : i32
    %c0_i32_0 = arith.constant 0 : i32
    %c0_i32_1 = arith.constant 0 : i32
    return %c0_i32, %c0_i32_0 : i32, i32
  }
  func.func @transform_3(%arg0: i32) -> (i32, i32, i32) {
    %c0_i32 = arith.constant 0 : i32
    %c0_i32_0 = arith.constant 0 : i32
    %c0_i32_1 = arith.constant 0 : i32
    return %arg0, %c0_i32, %c0_i32_0 : i32, i32, i32
  }
}

module attributes {stable_mosaic.version = 11 : i64} {
  func.func @input_proj_kernel(%arg0: i32, %arg1: memref<8x2x128xf32, #tpu.memory_space<vmem>>, %arg2: memref<128x384xf32, #tpu.memory_space<vmem>>, %arg3: memref<1x384xf32, #tpu.memory_space<vmem>>, %arg4: memref<8x2x384xf32, #tpu.memory_space<vmem>>) attributes {dimension_semantics = [#tpu.dimension_semantics<parallel>], iteration_bounds = array<i64: 1>, scalar_prefetch = 0 : i64, scratch_operands = 0 : i64, tpu.core_type = #tpu.core_type<tc>, window_params = [{transform_indices = @transform_0, window_bounds = array<i64: 8, 2, 128>}, {pipeline_mode = #tpu.pipeline_mode<synchronous>, transform_indices = @transform_1, window_bounds = array<i64: 128, 384>}, {pipeline_mode = #tpu.pipeline_mode<synchronous>, transform_indices = @transform_2, window_bounds = array<i64: 1, 384>}, {transform_indices = @transform_3, window_bounds = array<i64: 8, 2, 384>}]} {
    %c0 = arith.constant 0 : index
    %c0_0 = arith.constant 0 : index
    %c0_1 = arith.constant 0 : index
    %0 = vector.load %arg1[%c0, %c0_0, %c0_1] : memref<8x2x128xf32, #tpu.memory_space<vmem>>, vector<8x2x128xf32>
    %1 = vector.shape_cast %0 : vector<8x2x128xf32> to vector<16x128xf32>
    %c0_2 = arith.constant 0 : index
    %c0_3 = arith.constant 0 : index
    %2 = vector.load %arg2[%c0_2, %c0_3] : memref<128x384xf32, #tpu.memory_space<vmem>>, vector<128x384xf32>
    %cst = arith.constant dense<0.000000e+00> : vector<16x384xf32>
    %3 = tpu.matmul %1, %2, %cst {dimension_numbers = #tpu.dot_dimension_numbers<[1], [0], [0], [1], [0, 0, 1, 1], [], []>} : vector<16x128xf32>, vector<128x384xf32>, vector<16x384xf32> -> vector<16x384xf32>
    %c0_4 = arith.constant 0 : index
    %c0_5 = arith.constant 0 : index
    %4 = vector.load %arg3[%c0_4, %c0_5] : memref<1x384xf32, #tpu.memory_space<vmem>>, vector<1x384xf32>
    %5 = vector.broadcast %4 : vector<1x384xf32> to vector<16x384xf32>
    %6 = arith.addf %3, %5 : vector<16x384xf32>
    %7 = vector.shape_cast %6 : vector<16x384xf32> to vector<8x2x384xf32>
    %c0_6 = arith.constant 0 : index
    %c0_7 = arith.constant 0 : index
    %c0_8 = arith.constant 0 : index
    %8 = vector.load %arg4[%c0_6, %c0_7, %c0_8] : memref<8x2x384xf32, #tpu.memory_space<vmem>>, vector<8x2x384xf32>
    tpu.vector_store %arg4[%c0_6, %c0_7, %c0_8], %7 {strides = array<i32>} : memref<8x2x384xf32, #tpu.memory_space<vmem>>, vector<8x2x384xf32>,
    return
  }
  func.func @transform_0(%arg0: i32) -> (i32, i32, i32) {
    %c0_i32 = arith.constant 0 : i32
    %c0_i32_0 = arith.constant 0 : i32
    %c0_i32_1 = arith.constant 0 : i32
    return %arg0, %c0_i32, %c0_i32_0 : i32, i32, i32
  }
  func.func @transform_1(%arg0: i32) -> (i32, i32) {
    %c0_i32 = arith.constant 0 : i32
    %c0_i32_0 = arith.constant 0 : i32
    %c0_i32_1 = arith.constant 0 : i32
    return %c0_i32, %c0_i32_0 : i32, i32
  }
  func.func @transform_2(%arg0: i32) -> (i32, i32) {
    %c0_i32 = arith.constant 0 : i32
    %c0_i32_0 = arith.constant 0 : i32
    %c0_i32_1 = arith.constant 0 : i32
    return %c0_i32, %c0_i32_0 : i32, i32
  }
  func.func @transform_3(%arg0: i32) -> (i32, i32, i32) {
    %c0_i32 = arith.constant 0 : i32
    %c0_i32_0 = arith.constant 0 : i32
    %c0_i32_1 = arith.constant 0 : i32
    return %arg0, %c0_i32, %c0_i32_0 : i32, i32, i32
  }
}

module attributes {stable_mosaic.version = 11 : i64} {
  func.func @mask_proj_kernel(%arg0: i32, %arg1: i32, %arg2: memref<1x2xi32, #tpu.memory_space<vmem>>, %arg3: memref<8x2x128xf32, #tpu.memory_space<vmem>>, %arg4: memref<128x128xf32, #tpu.memory_space<vmem>>, %arg5: memref<1x128xf32, #tpu.memory_space<vmem>>, %arg6: memref<8x2x128xf32, #tpu.memory_space<vmem>>) attributes {dimension_semantics = [#tpu.dimension_semantics<parallel>, #tpu.dimension_semantics<parallel>], iteration_bounds = array<i64: 1, 1>, scalar_prefetch = 0 : i64, scratch_operands = 0 : i64, tpu.core_type = #tpu.core_type<tc>, window_params = [{pipeline_mode = #tpu.pipeline_mode<synchronous>, transform_indices = @transform_0, window_bounds = array<i64: 1, 2>}, {transform_indices = @transform_1, window_bounds = array<i64: 8, 2, 128>}, {transform_indices = @transform_2, window_bounds = array<i64: 128, 128>}, {transform_indices = @transform_3, window_bounds = array<i64: 1, 128>}, {transform_indices = @transform_4, window_bounds = array<i64: 8, 2, 128>}]} {
    %c8_i32 = arith.constant 8 : i32
    %0 = arith.muli %arg0, %c8_i32 : i32
    %1 = tpu.iota {dimensions = array<i32: 0>} : vector<8x2xi32>
    %2 = vector.broadcast %0 : i32 to vector<8x2xi32>
    %3 = arith.addi %2, %1 : vector<8x2xi32>
    %c0 = arith.constant 0 : index
    %c0_0 = arith.constant 0 : index
    %4 = vector.load %arg2[%c0, %c0_0] : memref<1x2xi32, #tpu.memory_space<vmem>>, vector<1x2xi32>
    %c1_i32 = arith.constant 1 : i32
    %5 = vector.broadcast %c1_i32 : i32 to vector<1x2xi32>
    %6 = arith.subi %4, %5 : vector<1x2xi32>
    %7 = vector.broadcast %6 : vector<1x2xi32> to vector<8x2xi32>
    %8 = arith.cmpi slt, %3, %7 : vector<8x2xi32>
    %9 = arith.extui %8 : vector<8x2xi1> to vector<8x2xi32>
    %10 = arith.sitofp %9 : vector<8x2xi32> to vector<8x2xf32>
    %c0_1 = arith.constant 0 : index
    %c0_2 = arith.constant 0 : index
    %c0_3 = arith.constant 0 : index
    %11 = vector.load %arg3[%c0_1, %c0_2, %c0_3] : memref<8x2x128xf32, #tpu.memory_space<vmem>>, vector<8x2x128xf32>
    %12 = vector.shape_cast %10 : vector<8x2xf32> to vector<8x2x1xf32>
    %13 = vector.broadcast %12 : vector<8x2x1xf32> to vector<8x2x128xf32>
    %14 = arith.mulf %11, %13 : vector<8x2x128xf32>
    %15 = vector.shape_cast %14 : vector<8x2x128xf32> to vector<16x128xf32>
    %c0_4 = arith.constant 0 : index
    %c0_5 = arith.constant 0 : index
    %16 = vector.load %arg4[%c0_4, %c0_5] : memref<128x128xf32, #tpu.memory_space<vmem>>, vector<128x128xf32>
    %cst = arith.constant dense<0.000000e+00> : vector<16x128xf32>
    %17 = tpu.matmul %15, %16, %cst {dimension_numbers = #tpu.dot_dimension_numbers<[1], [0], [0], [1], [0, 0, 1, 1], [], []>} : vector<16x128xf32>, vector<128x128xf32>, vector<16x128xf32> -> vector<16x128xf32>
    %c0_6 = arith.constant 0 : index
    %c0_7 = arith.constant 0 : index
    %18 = vector.load %arg5[%c0_6, %c0_7] : memref<1x128xf32, #tpu.memory_space<vmem>>, vector<1x128xf32>
    %19 = vector.broadcast %18 : vector<1x128xf32> to vector<16x128xf32>
    %20 = arith.addf %17, %19 : vector<16x128xf32>
    %21 = vector.shape_cast %20 : vector<16x128xf32> to vector<8x2x128xf32>
    %c0_8 = arith.constant 0 : index
    %c0_9 = arith.constant 0 : index
    %c0_10 = arith.constant 0 : index
    %22 = vector.load %arg6[%c0_8, %c0_9, %c0_10] : memref<8x2x128xf32, #tpu.memory_space<vmem>>, vector<8x2x128xf32>
    tpu.vector_store %arg6[%c0_8, %c0_9, %c0_10], %21 {strides = array<i32>} : memref<8x2x128xf32, #tpu.memory_space<vmem>>, vector<8x2x128xf32>,
    return
  }
  func.func @transform_0(%arg0: i32, %arg1: i32) -> (i32, i32) {
    %c0_i32 = arith.constant 0 : i32
    %c0_i32_0 = arith.constant 0 : i32
    %c0_i32_1 = arith.constant 0 : i32
    return %c0_i32, %c0_i32_0 : i32, i32
  }
  func.func @transform_1(%arg0: i32, %arg1: i32) -> (i32, i32, i32) {
    %c0_i32 = arith.constant 0 : i32
    %c0_i32_0 = arith.constant 0 : i32
    %c0_i32_1 = arith.constant 0 : i32
    return %arg0, %c0_i32, %c0_i32_0 : i32, i32, i32
  }
  func.func @transform_2(%arg0: i32, %arg1: i32) -> (i32, i32) {
    %c0_i32 = arith.constant 0 : i32
    %c0_i32_0 = arith.constant 0 : i32
    return %c0_i32, %arg1 : i32, i32
  }
  func.func @transform_3(%arg0: i32, %arg1: i32) -> (i32, i32) {
    %c0_i32 = arith.constant 0 : i32
    %c0_i32_0 = arith.constant 0 : i32
    return %c0_i32, %arg1 : i32, i32
  }
  func.func @transform_4(%arg0: i32, %arg1: i32) -> (i32, i32, i32) {
    %c0_i32 = arith.constant 0 : i32
    %c0_i32_0 = arith.constant 0 : i32
    return %arg0, %c0_i32, %arg1 : i32, i32, i32
  }
}

</mosaic_0001>

<bundles_post_ra>
// kernel: sensibility_birnn_forward.11
= control target key start
LH: loop header
LB: loop body
LE: loop exit
PB: predicated region body
PF: predicated region fallthrough
CT: control target
= control target key end

     0   :  { %v18_v0 = vlaneseq  ;;  %v395_v20 = vmov 0.0   ;;  %v396_v47 = vmov 1983009808   ;;  %s536_s0 = inlined_call_operand.vmem [shape: s32[1,2], index: 0, kind: input, shape index: {}]   ;;  %s537_s2 = inlined_call_operand.vmem [shape: f32[128,128], index: 2, kind: input, shape index: {}]   ;;  %s538_s1 = inlined_call_operand.vmem [shape: f32[8,2,128], index: 1, kind: input, shape index: {}]   ;;  %s539_s3 = inlined_call_operand.vmem [shape: f32[1,128], index: 3, kind: input, shape index: {}]   ;;  %s540_s4 = inlined_call_operand.vmem [shape: f32[8,2,128], index: 4, kind: output, shape index: {}]  }
   0x1   :  { %v22_v1 = vld [vmem:[%s536_s0] sm:$0x1]  ;;  %v104_v3 = vld [vmem:[%s537_s2 + $0x8] sm:$0xff]  ;;  %v105_v7 = vld [vmem:[%s537_s2 + $0x10] sm:$0xff]  ;;  %v137_v48 = vunpack.c.l.s4 %v396_v47 }
   0x2   :  { %v103_v2 = vld [vmem:[%s537_s2] sm:$0xff]  ;;  %v431_v4 = vshrl.u32 %v18_v0, 7  ;;  %v301_v5 = vadd.s32 4294967295, %v22_v1  ;;  %v106_v8 = vld [vmem:[%s537_s2 + $0x18] sm:$0xff]  ;;  %v108_v11 = vld [vmem:[%s537_s2 + $0x28] sm:$0xff] }
   0x3   :  { %v361_v6 = vpack.c.bf16 %v104_v3, %v103_v2  ;;  %v365_v9 = vpack.c.bf16 %v106_v8, %v105_v7  ;;  %v107_v10 = vld [vmem:[%s537_s2 + $0x20] sm:$0xff]  ;;  %v109_v16 = vld [vmem:[%s537_s2 + $0x30] sm:$0xff]  ;;  %v110_v17 = vld [vmem:[%s537_s2 + $0x38] sm:$0xff]  ;;  %v138_v51 = vunpack.c.0.s8 %v137_v48 }
   0x4   :  { %v26_v12 = vsub.s32 0, %v431_v4  ;;  %v55_v14 = vsub.s32 2, %v431_v4  ;;  %v369_v15 = vpack.c.bf16 %v108_v11, %v107_v10  ;;  %v62_v18 = vsub.s32 3, %v431_v4  ;;  %v111_v25 = vld [vmem:[%s537_s2 + $0x40] sm:$0xff]  ;;  %v112_v26 = vld [vmem:[%s537_s2 + $0x48] sm:$0xff]  ;;  %v113_v32 = vld [vmem:[%s537_s2 + $0x50] sm:$0xff] }
   0x5   :  { %362 = vmatprep.subr.bf16.mxu0 %v361_v6  ;;  %v48_v19 = vsub.s32 1, %v431_v4  ;;  %v373_v24 = vpack.c.bf16 %v110_v17, %v109_v16  ;;  %v76_v29 = vsub.s32 5, %v431_v4  ;;  %v69_v30 = vsub.s32 4, %v431_v4  ;;  %v114_v33 = vld [vmem:[%s537_s2 + $0x58] sm:$0xff]  ;;  %v115_v39 = vld [vmem:[%s537_s2 + $0x60] sm:$0xff]  ;;  %v116_v40 = vld [vmem:[%s537_s2 + $0x68] sm:$0xff] }
   0x6   :  { %364 = vmatpush3.bf16.msra.mxu0 %v361_v6  ;;  %v27_v13 = vrot.slane %v301_v5, %v26_v12  ;;  %v377_v31 = vpack.c.bf16 %v112_v26, %v111_v25  ;;  %v90_v36 = vsub.s32 7, %v431_v4  ;;  %v83_v37 = vsub.s32 6, %v431_v4  ;;  %v117_v44 = vld [vmem:[%s537_s2 + $0x70] sm:$0xff]  ;;  %v118_v45 = vld [vmem:[%s537_s2 + $0x78] sm:$0xff]  ;;  %v33_v52 = vld [vmem:[%s538_s1 + $0x4] sm:$0x3] }
   0x7   :  { %366 = vmatprep.subr.bf16.mxu0 %v365_v9  ;;  %v381_v38 = vpack.c.bf16 %v114_v33, %v113_v32  ;;  %v385_v43 = vpack.c.bf16 %v116_v40, %v115_v39  ;;  %v389_v46 = vpack.c.bf16 %v118_v45, %v117_v44  ;;  %v31_v53 = vld [vmem:[%s538_s1] sm:$0x3]  ;;  %v34_v54 = vld [vmem:[%s538_s1 + $0x6] sm:$0x3]  ;;  %v32_v55 = vld [vmem:[%s538_s1 + $0x2] sm:$0x3]  ;;  %v141_v58 = vsub.s32 %v138_v51, %v431_v4 }
   0x8   :  { %vm28_vm0 = vcmp.lt.s32.totalorder %v431_v4, %v27_v13  ;;  %v36_v63 = vld [vmem:[%s538_s1 + $0xa] sm:$0x3]  ;;  %v35_v0 = vld [vmem:[%s538_s1 + $0x8] sm:$0x3]  ;;  %v37_v10 = vld [vmem:[%s538_s1 + $0xc] sm:$0x3] }
   0x9   :  { %v302_v21 = vsel %vm28_vm0, 1.0, %v395_v20 }
   0xa   :  { %368 = vmatpush3.bf16.msra.mxu0 %v365_v9  ;;  %v56_v22 = vrot.slane %v302_v21, %v55_v14  ;;  %v42_v23 = vrot.slane %v302_v21, %v26_v12  ;;  %v63_v27 = vrot.slane %v302_v21, %v62_v18  ;;  %v49_v28 = vrot.slane %v302_v21, %v48_v19  ;;  %v38_v9 = vld [vmem:[%s538_s1 + $0xe] sm:$0x3] }
   0xb   :  { %370 = vmatprep.subr.bf16.mxu0 %v369_v15  ;;  %v77_v34 = vrot.slane %v302_v21, %v76_v29  ;;  %v70_v35 = vrot.slane %v302_v21, %v69_v30  ;;  %v91_v41 = vrot.slane %v302_v21, %v90_v36  ;;  %v84_v42 = vrot.slane %v302_v21, %v83_v37  ;;  %v303_v21 = vld [vmem:[%s539_s3] ss:$0 sm:$0xff] }
   0xc   :  { %58 = vbcast.lane.b32.xlu1 %v56_v22, 256  ;;  %44 = vbcast.lane.b32.xlu0 %v42_v23, 256 }
   0xe   :  { %372 = vmatpush3.bf16.msra.mxu0 %v369_v15 }
   0xf   :  { %374 = vmatprep.subr.bf16.mxu0 %v373_v24 }
  0x10   :  { %65 = vbcast.lane.b32.xlu1 %v63_v27, 256  ;;  %51 = vbcast.lane.b32.xlu0 %v49_v28, 256 }
  0x12   :  { %376 = vmatpush3.bf16.msra.mxu0 %v373_v24 }
  0x13   :  { %378 = vmatprep.subr.bf16.mxu0 %v377_v31 }
  0x14   :  { %79 = vbcast.lane.b32.xlu1 %v77_v34, 256  ;;  %72 = vbcast.lane.b32.xlu0 %v70_v35, 256 }
  0x16   :  { %380 = vmatpush3.bf16.msra.mxu0 %v377_v31 }
  0x17   :  { %382 = vmatprep.subr.bf16.mxu0 %v381_v38 }
  0x18   :  { %93 = vbcast.lane.b32.xlu1 %v91_v41, 256  ;;  %86 = vbcast.lane.b32.xlu0 %v84_v42, 256 }
  0x1a   :  { %384 = vmatpush3.bf16.msra.mxu0 %v381_v38 }
  0x1b   :  { %386 = vmatprep.subr.bf16.mxu0 %v385_v43 }
  0x1e   :  { %388 = vmatpush3.bf16.msra.mxu0 %v385_v43 }
  0x1f   :  { %390 = vmatprep.subr.bf16.mxu0 %v389_v46 }
  0x22   :  { %392 = vmatpush3.bf16.msra.mxu0 %v389_v46 }
  0x7e   :  { %v59_v49 = vpop.permute.xlu1 %58  ;;  %v45_v50 = vpop.permute.xlu0 %44 }
  0x7f   :  { %v97_v59 = vmul.f32 %v59_v49, %v33_v52  ;;  %v95_v60 = vmul.f32 %v45_v50, %v31_v53 }
  0x82   :  { %v66_v56 = vpop.permute.xlu1 %65  ;;  %v52_v57 = vpop.permute.xlu0 %51 }
  0x83   :  { %v98_v61 = vmul.f32 %v66_v56, %v34_v54  ;;  %v96_v62 = vmul.f32 %v52_v57, %v32_v55 }
  0x85   :  { %v135_v1 = vcombine.low %v97_v59, %v98_v61  ;;  %v134_v2 = vcombine.low %v95_v60, %v96_v62 }
  0x86   :  { %v80_v3 = vpop.permute.xlu1 %79  ;;  %v73_v5 = vpop.permute.xlu0 %72 }
  0x87   :  { %v100_v6 = vmul.f32 %v80_v3, %v36_v63  ;;  %v99_v7 = vmul.f32 %v73_v5, %v35_v0  ;;  %v142_v8 = vrot.slane %v134_v2, %v141_v58  ;;  %v149_v4 = vrot.slane %v135_v1, %v141_v58 }
  0x89   :  { %v150_v11 = vcombine.low %v142_v8, %v149_v4  ;;  %v151_v14 = vcombine.low %v99_v7, %v100_v6 }
  0x8a   :  { %v94_v12 = vpop.permute.xlu1 %93  ;;  %v87_v13 = vpop.permute.xlu0 %86 }
  0x8b   :  { %v102_v15 = vmul.f32 %v94_v12, %v38_v9  ;;  %v101_v16 = vmul.f32 %v87_v13, %v37_v10  ;;  %358 = vmatprep.mubr.f32.mxu0 %v150_v11  ;;  %v159_v18 = vrot.slane %v151_v14, %v141_v58 }
  0x8d   :  { %v152_v17 = vcombine.low %v101_v16, %v102_v15 }
  0x8f   :  { %v166_v19 = vrot.slane %v152_v17, %v141_v58 }
  0x91   :  { %v167_v20 = vcombine.low %v159_v18, %v166_v19 }
  0x93   :  { %359 = vmatmul.mubr.f32.vlgmr.msra.gmra.mrb[0].mxu0 %v167_v20 }
 0x166   :  { %v360_v22 = vpop.f32.mrb[0].mxu0 }
 0x167   :  { %v242_v23 = vadd.f32 %v360_v22, %v303_v21  ;;  %v236_v24 = vpop.f32.mrb[1].mxu0 }
 0x168   :  { %v237_v25 = vadd.f32 %v303_v21, %v236_v24 }
 0x169   :  { %v264_v26 = vcombine.high %v242_v23, %v242_v23  ;;  %v271_v27 = vrot.slane %v242_v23, %v141_v58  ;;  %306 = vst.sshfl [vmem:[%s540_s4 + $0x8] sm:$0x3 pattern:$0x76325410] %v242_v23 }
 0x16a   :  { %v247_v28 = vcombine.high %v237_v25, %v237_v25  ;;  %v254_v29 = vrot.slane %v237_v25, %v141_v58  ;;  %304 = vst.sshfl [vmem:[%s540_s4] sm:$0x3 pattern:$0x76325410] %v237_v25 }
 0x16b   :  { %v278_v30 = vrot.slane %v264_v26, %v141_v58  ;;  %v279_v31 = vcombine.high %v271_v27, %v271_v27  ;;  %307 = vst.sshfl [vmem:[%s540_s4 + $0xc] sm:$0x3 pattern:$0x76325410] %v264_v26 }
 0x16c   :  { %v261_v32 = vrot.slane %v247_v28, %v141_v58  ;;  %v262_v33 = vcombine.high %v254_v29, %v254_v29  ;;  %305 = vst.sshfl [vmem:[%s540_s4 + $0x4] sm:$0x3 pattern:$0x76325410] %v247_v28 }
 0x16d   :  { %v280_v34 = vcombine.high %v278_v30, %v278_v30  ;;  %294 = vst [vmem:[%s540_s4 + $0xa] sm:$0x3] %v279_v31 }
 0x16e   :  { %v263_v35 = vcombine.high %v261_v32, %v261_v32  ;;  %290 = vst [vmem:[%s540_s4 + $0x2] sm:$0x3] %v262_v33 }
 0x16f   :  { %296 = vst [vmem:[%s540_s4 + $0xe] sm:$0x3] %v280_v34 }
 0x170   :  { %292 = vst [vmem:[%s540_s4 + $0x6] sm:$0x3] %v263_v35 }

// kernel: sensibility_birnn_forward.10
= control target key start
LH: loop header
LB: loop body
LE: loop exit
PB: predicated region body
PF: predicated region fallthrough
CT: control target
= control target key end

     0   :  { %s638_s12 = smov 0   ;;  %s816_s0 = inlined_call_operand.vmem [shape: f32[8,2,384], index: 0, kind: input, shape index: {}]   ;;  %s817_s1 = inlined_call_operand.vmem [shape: f32[128,384], index: 1, kind: input, shape index: {}]   ;;  %s818_s2 = inlined_call_operand.vmem [shape: f32[1,384], index: 2, kind: input, shape index: {}]   ;;  %s819_s3 = inlined_call_operand.vmem [shape: f32[8,2,128], index: 3, kind: output, shape index: {}]  }
   0x1 LB: > { %s463_s13 = sadd.s32 4294967295, %s612_s12   ;;  %p467_p0 = scmp.ge.s32.totalorder %s612_s12, 1  ;;  %s612_s12 = sphi %s638_s12, %s13_s12  }
   0x2   : > { %p137_p1 = scmp.lt.s32.totalorder %s612_s12, 9 }
   0x4   : > { %p138_p2 = pnand %p467_p0, %p137_p1 }
   0x5   : > { %p160_p3 = scmp.lt.s32.totalorder (!%p138_p2), %s463_s13, 7  ;;  %p470_p4 = scmp.ne.s32.totalorder (!%p138_p2), %s463_s13, 0 }
   0x6   : > { %141 = sbr.rel (%p138_p2) target bundleno = 318 (0x13e), region = 32 }
   0xd   : > { %s161_s14 = scalar_select %p160_p3, %s463_s13, 7 }
   0xe   : > { %172 = sbr.rel (%p470_p4) target bundleno = 21 (0x15), region = 36  ;;  %v614_v0 = vmov (!%p470_p4), 0.0  }
   0xf   : > { %s583_s15 = smul.u32 6, %s161_s14  ;;  %s469_s16 = sshll.u32 %s161_s14, 1  ;;  %173 = vst [vmem:[#allocation2] sm:$0x3] (!%p470_p4), %v614_v0 }
  0x10   : > { %s649_s19 = scalar_lea.vmem %s819_s3, %s469_s16 }
  0x11   : > { %s654_s22 = scalar_lea.vmem %s816_s0, %s583_s15 }
  0x15 PF: > { %v177_v1 = vld [vmem:[%s817_s1 + $0x8] sm:$0xff]  ;;  %v180_v2 = vld [vmem:[%s817_s1 + $0x20] sm:$0xff]  ;;  %v179_v5 = vld [vmem:[%s817_s1 + $0x18] sm:$0xff]  ;;  %v615_v8 = vmov 0.0|0.0   ;;  %v616_v9 = vmov 0.0   ;;  %vm617_vm0 = vmmov 0  }
  0x16   : > { %v176_v3 = vld [vmem:[%s817_s1] sm:$0xff]  ;;  %v527_v4 = vpack.c.bf16 %v180_v2, %v177_v1  ;;  %v183_v6 = vld [vmem:[%s817_s1 + $0x38] sm:$0xff]  ;;  %v186_v7 = vld [vmem:[%s817_s1 + $0x50] sm:$0xff]  ;;  %559 = vmatprep.subr.bf16.mxu1 %v615_v8  ;;  %305 = vmatprep.mubr.f32.mxu0 %v616_v9 }
  0x17   : > { %v529_v10 = vpack.c.bf16 %v179_v5, %v176_v3  ;;  %v531_v11 = vpack.c.bf16 %v186_v7, %v183_v6  ;;  %v182_v12 = vld [vmem:[%s817_s1 + $0x30] sm:$0xff]  ;;  %v185_v13 = vld [vmem:[%s817_s1 + $0x48] sm:$0xff]  ;;  %524 = vmatprep.mubr.msk.f32.mxu1 %vm617_vm0, %v616_v9  ;;  %v192_v15 = vld [vmem:[%s817_s1 + $0x80] sm:$0xff] }
  0x18   : > { %v189_v14 = vld [vmem:[%s817_s1 + $0x68] sm:$0xff]  ;;  %528 = vmatprep.subr.bf16.mxu0 %v527_v4  ;;  %v533_v16 = vpack.c.bf16 %v185_v13, %v182_v12  ;;  %v188_v18 = vld [vmem:[%s817_s1 + $0x60] sm:$0xff]  ;;  %v191_v19 = vld [vmem:[%s817_s1 + $0x78] sm:$0xff]  ;;  %v226_v13 = vlaneseq }
  0x19   : > { %530 = vmatpush1.bf16.msra.mxu0 %v529_v10  ;;  %v535_v17 = vpack.c.bf16 %v192_v15, %v189_v14  ;;  %v195_v20 = vld [vmem:[%s817_s1 + $0x98] sm:$0xff]  ;;  %v198_v21 = vld [vmem:[%s817_s1 + $0xb0] sm:$0xff]  ;;  %v537_v22 = vpack.c.bf16 %v191_v19, %v188_v18  ;;  %v197_v25 = vld [vmem:[%s817_s1 + $0xa8] sm:$0xff] }
  0x1a   : > { %532 = vmatprep.subr.bf16.mxu0 %v531_v11  ;;  %v539_v23 = vpack.c.bf16 %v198_v21, %v195_v20  ;;  %v194_v24 = vld [vmem:[%s817_s1 + $0x90] sm:$0xff]  ;;  %v201_v26 = vld [vmem:[%s817_s1 + $0xc8] sm:$0xff]  ;;  %v204_v27 = vld [vmem:[%s817_s1 + $0xe0] sm:$0xff]  ;;  %v227_v14 = vshrl.u32 %v226_v13, 7 }
  0x1b   : > { %v178_v28 = vld [vmem:[%s817_s1 + $0x10] sm:$0xff]  ;;  %v181_v29 = vld [vmem:[%s817_s1 + $0x28] sm:$0xff]  ;;  %v184_v31 = vld [vmem:[%s817_s1 + $0x40] sm:$0xff]  ;;  %v541_v32 = vpack.c.bf16 %v197_v25, %v194_v24  ;;  %v543_v34 = vpack.c.bf16 %v204_v27, %v201_v26 }
  0x1c   : > { %v560_v30 = vpack.c.bf16 %v181_v29, %v178_v28  ;;  %v187_v33 = vld [vmem:[%s817_s1 + $0x58] sm:$0xff]  ;;  %v200_v35 = vld [vmem:[%s817_s1 + $0xc0] sm:$0xff]  ;;  %v210_v39 = vld [vmem:[%s817_s1 + $0x110] sm:$0xff]  ;;  %v228_v15 = vsub.s32 0, %v227_v14 }
  0x1d   : > { %534 = vmatpush1.bf16.msra.mxu0 %v533_v16  ;;  %v203_v36 = vld [vmem:[%s817_s1 + $0xd8] sm:$0xff]  ;;  %v563_v38 = vpack.c.bf16 %v187_v33, %v184_v31  ;;  %v190_v40 = vld [vmem:[%s817_s1 + $0x70] sm:$0xff]  ;;  %v193_v41 = vld [vmem:[%s817_s1 + $0x88] sm:$0xff]  ;;  %v236_v33 = vsub.s32 2, %v227_v14 }
  0x1e   : > { %536 = vmatprep.subr.bf16.mxu0 %v535_v17  ;;  %v207_v37 = vld [vmem:[%s817_s1 + $0xf8] sm:$0xff]  ;;  %561 = vmatpush3.bf16.msra.mxu1 %v560_v30  ;;  %v545_v42 = vpack.c.bf16 %v203_v36, %v200_v35  ;;  %v206_v44 = vld [vmem:[%s817_s1 + $0xf0] sm:$0xff]  ;;  %v209_v45 = vld [vmem:[%s817_s1 + $0x108] sm:$0xff]  ;;  %v566_v47 = vpack.c.bf16 %v193_v41, %v190_v40  ;;  %v232_v17 = vsub.s32 1, %v227_v14 }
  0x1f   : > { %562 = vmatprep.subr.bf16.mxu1 %v615_v8  ;;  %v547_v43 = vpack.c.bf16 %v210_v39, %v207_v37  ;;  %v213_v46 = vld [vmem:[%s817_s1 + $0x128] sm:$0xff]  ;;  %v216_v48 = vld [vmem:[%s817_s1 + $0x140] sm:$0xff]  ;;  %v199_v50 = vld [vmem:[%s817_s1 + $0xb8] sm:$0xff]  ;;  %v549_v51 = vpack.c.bf16 %v209_v45, %v206_v44 }
  0x20   : > { %v196_v49 = vld [vmem:[%s817_s1 + $0xa0] sm:$0xff]  ;;  %v551_v52 = vpack.c.bf16 %v216_v48, %v213_v46  ;;  %v215_v54 = vld [vmem:[%s817_s1 + $0x138] sm:$0xff]  ;;  %v222_v57 = vld [vmem:[%s817_s1 + $0x170] sm:$0xff] }
  0x21   : > { %538 = vmatpush1.bf16.msra.mxu0 %v537_v22  ;;  %v212_v53 = vld [vmem:[%s817_s1 + $0x120] sm:$0xff]  ;;  %v219_v55 = vld [vmem:[%s817_s1 + $0x158] sm:$0xff]  ;;  %v569_v56 = vpack.c.bf16 %v199_v50, %v196_v49  ;;  %v202_v58 = vld [vmem:[%s817_s1 + $0xd0] sm:$0xff] }
  0x22   : > { %540 = vmatprep.subr.bf16.mxu0 %v539_v23  ;;  %564 = vmatpush3.bf16.msra.mxu1 %v563_v38  ;;  %v205_v59 = vld [vmem:[%s817_s1 + $0xe8] sm:$0xff]  ;;  %v553_v60 = vpack.c.bf16 %v215_v54, %v212_v53  ;;  %v555_v61 = vpack.c.bf16 %v222_v57, %v219_v55  ;;  %v218_v62 = vld [vmem:[%s817_s1 + $0x150] sm:$0xff]  ;;  %v208_v1 = vld [vmem:[%s817_s1 + $0x100] sm:$0xff] }
  0x23   : > { %565 = vmatprep.subr.bf16.mxu1 %v615_v8  ;;  %v221_v63 = vld [vmem:[%s817_s1 + $0x168] sm:$0xff]  ;;  %v572_v0 = vpack.c.bf16 %v205_v59, %v202_v58  ;;  %v211_v2 = vld [vmem:[%s817_s1 + $0x118] sm:$0xff]  ;;  %v214_v5 = vld [vmem:[%s817_s1 + $0x130] sm:$0xff] }
  0x24   : > { %v557_v3 = vpack.c.bf16 %v221_v63, %v218_v62  ;;  %v575_v4 = vpack.c.bf16 %v211_v2, %v208_v1  ;;  %v217_v6 = vld [vmem:[%s817_s1 + $0x148] sm:$0xff]  ;;  %v174_v7 = vld [vmem:[#allocation2] sm:$0x3]  ;;  %v223_v11 = vld [vmem:[%s817_s1 + $0x178] sm:$0xff] }
  0x25   : > { %542 = vmatpush1.bf16.msra.mxu0 %v541_v32  ;;  %v578_v9 = vpack.c.bf16 %v217_v6, %v214_v5  ;;  %v220_v10 = vld [vmem:[%s817_s1 + $0x160] sm:$0xff] }
  0x26   : > { %544 = vmatprep.subr.bf16.mxu0 %v543_v34  ;;  %567 = vmatpush3.bf16.msra.mxu1 %v566_v47  ;;  %v581_v12 = vpack.c.bf16 %v223_v11, %v220_v10  ;;  %v224_v16 = vld [vmem:[%s818_s2] sm:$0x7] }
  0x27   : > { %568 = vmatprep.subr.bf16.mxu1 %v615_v8  ;;  %v229_v18 = vrot.slane %v224_v16, %v228_v15  ;;  %v233_v19 = vrot.slane %v224_v16, %v232_v17  ;;  %v175_v20 = vld [vmem:[%s654_s22] sm:$0x3f]  ;;  %v237_v34 = vrot.slane %v224_v16, %v236_v33 }
  0x28   : > { %v390_v25 = vrot.slane %v175_v20, 2  ;;  %v400_v38 = vrot.slane %v175_v20, 4 }
  0x29   : > { %546 = vmatpush1.bf16.msra.mxu0 %v545_v42 }
  0x2a   : > { %548 = vmatprep.subr.bf16.mxu0 %v547_v43  ;;  %570 = vmatpush3.bf16.msra.mxu1 %v569_v56 }
  0x2b   : > { %571 = vmatprep.subr.bf16.mxu1 %v615_v8 }
  0x2d   : > { %550 = vmatpush1.bf16.msra.mxu0 %v549_v51 }
  0x2e   : > { %552 = vmatprep.subr.bf16.mxu0 %v551_v52  ;;  %573 = vmatpush3.bf16.msra.mxu1 %v572_v0 }
  0x2f   : > { %574 = vmatprep.subr.bf16.mxu1 %v615_v8 }
  0x31   : > { %554 = vmatpush1.bf16.msra.mxu0 %v553_v60 }
  0x32   : > { %556 = vmatprep.subr.bf16.mxu0 %v555_v61  ;;  %576 = vmatpush3.bf16.msra.mxu1 %v575_v4 }
  0x33   : > { %577 = vmatprep.subr.bf16.mxu1 %v615_v8 }
  0x35   : > { %558 = vmatpush1.bf16.msra.mxu0 %v557_v3 }
  0x36   : > { %579 = vmatpush3.bf16.msra.mxu1 %v578_v9 }
  0x37   : > { %580 = vmatprep.subr.bf16.mxu1 %v615_v8 }
  0x38   : > { %306 = vmatmul.mubr.f32.vlgmr.msra.gmra.mrb[0].mxu0 %v174_v7 }
  0x3a   : > { %582 = vmatpush3.bf16.msra.mxu1 %v581_v12 }
  0x3d   : > { %525 = vmatmul.mubr.f32.vlgmr.msra.gmra.mrb[0].mxu1 %v174_v7 }
 0x10b   : > { %v307_v21 = vpop.f32.mrb[0].mxu0 }
 0x10c   : > { %v308_v22 = vadd.f32 %v307_v21, %v229_v18  ;;  %v309_v23 = vpop.f32.mrb[1].mxu0 }
 0x10d   : > { %v310_v24 = vadd.f32 %v309_v23, %v233_v19 }
 0x10e   : > { %v382_v26 = vadd.f32 %v308_v22, %v175_v20 }
 0x10f   : > { %v392_v27 = vadd.f32 %v390_v25, %v310_v24 }
 0x110   : > { %v471_v8 = vmul.f32 -1.442695, %v382_v26  ;;  %v378_v28 = vpop.f32.mrb[0].mxu1 }
 0x111   : > { %v472_v29 = vmul.f32 -1.442695, %v392_v27  ;;  %v526_v30 = vpop.f32.mrb[1].mxu1  ;;  %v379_v37 = vadd.f32 %v378_v28, %v237_v34 }
 0x112   : > { %596 = vpow2.f32 %v471_v8 }
 0x113   : > { %598 = vpow2.f32 %v472_v29 }
 0x11c   : > { %v597_v31 = vpop.eup %596 }
 0x11d   : > { %v386_v32 = vadd.f32 1.0, %v597_v31  ;;  %v599_v35 = vpop.eup %598 }
 0x11e   : > { %v396_v36 = vadd.f32 1.0, %v599_v35 }
 0x11f   : > { %600 = vrcp.f32 %v386_v32 }
 0x120   : > { %602 = vrcp.f32 %v396_v36 }
 0x129   : > { %v601_v39 = vpop.eup %600 }
 0x12a   : > { %v399_v40 = vmul.f32 %v601_v39, %v379_v37  ;;  %v603_v42 = vpop.eup %602 }
 0x12b   : > { %v404_v43 = vsub.f32 1.0, %v603_v42  ;;  %v406_v45 = vmul.f32 %v603_v42, %v174_v7 }
 0x12c   : > { %v402_v41 = vadd.f32 %v400_v38, %v399_v40 }
 0x12e   : > { %604 = vtanh.f32 %v402_v41 }
 0x138   : > { %v605_v44 = vpop.eup %604 }
 0x139   : > { %v405_v46 = vmul.f32 %v605_v44, %v404_v43 }
 0x13b   : > { %v407_v47 = vadd.f32 %v406_v45, %v405_v46 }
 0x13d   : > { %408 = vst [vmem:[#allocation2] sm:$0x3] %v407_v47  ;;  %409 = vst [vmem:[%s649_s19] sm:$0x3] %v407_v47 }
 0x13e PF: > { %s13_s12 = sadd.s32 1, %s612_s12  }
 0x13f   : > { %p10_p5 = scmp.ge.s32.totalorder %s13_s12, 10  }
 0x141   :  { %12 = sbr.rel (!%p10_p5) target bundleno = 1 (0x1), region = 66 }

// kernel: sensibility_birnn_forward.9
= control target key start
LH: loop header
LB: loop body
LE: loop exit
PB: predicated region body
PF: predicated region fallthrough
CT: control target
= control target key end

     0   :  { %v498_v3 = vmov 0.0   ;;  %v72_v31 = vlaneseq  ;;  %v499_v32 = vmov 1983009808   ;;  %s737_s1 = inlined_call_operand.vmem [shape: f32[128,384], index: 1, kind: input, shape index: {}]   ;;  %s738_s0 = inlined_call_operand.vmem [shape: f32[8,2,128], index: 0, kind: input, shape index: {}]   ;;  %s739_s2 = inlined_call_operand.vmem [shape: f32[1,384], index: 2, kind: input, shape index: {}]   ;;  %s740_s3 = inlined_call_operand.vmem [shape: f32[8,2,384], index: 3, kind: output, shape index: {}]  }
   0x1   :  { %v23_v0 = vld [vmem:[%s737_s1 + $0x8] sm:$0xff]  ;;  %v26_v1 = vld [vmem:[%s737_s1 + $0x20] sm:$0xff]  ;;  %v24_v2 = vld [vmem:[%s737_s1 + $0x10] sm:$0xff]  ;;  %195 = vmatprep.mubr.f32.mxu0 %v498_v3  ;;  %v98_v33 = vunpack.c.l.s4 %v499_v32 }
   0x2   :  { %v432_v4 = vpack.c.bf16 %v26_v1, %v23_v0  ;;  %v27_v5 = vld [vmem:[%s737_s1 + $0x28] sm:$0xff]  ;;  %v22_v6 = vld [vmem:[%s737_s1] sm:$0xff]  ;;  %v25_v7 = vld [vmem:[%s737_s1 + $0x18] sm:$0xff]  ;;  %v605_v43 = vshrl.u32 %v72_v31, 7 }
   0x3   :  { %v464_v8 = vpack.c.bf16 %v27_v5, %v24_v2  ;;  %v434_v9 = vpack.c.bf16 %v25_v7, %v22_v6  ;;  %v29_v10 = vld [vmem:[%s737_s1 + $0x38] sm:$0xff]  ;;  %v32_v11 = vld [vmem:[%s737_s1 + $0x50] sm:$0xff]  ;;  %v30_v12 = vld [vmem:[%s737_s1 + $0x40] sm:$0xff]  ;;  %v99_v44 = vunpack.c.0.s8 %v98_v33 }
   0x4   :  { %433 = vmatprep.subr.bf16.mxu0 %v432_v4  ;;  %v436_v13 = vpack.c.bf16 %v32_v11, %v29_v10  ;;  %v33_v14 = vld [vmem:[%s737_s1 + $0x58] sm:$0xff]  ;;  %v28_v15 = vld [vmem:[%s737_s1 + $0x30] sm:$0xff]  ;;  %v31_v16 = vld [vmem:[%s737_s1 + $0x48] sm:$0xff] }
   0x5   :  { %465 = vmatprep.subr.bf16.mxu1 %v464_v8  ;;  %435 = vmatpush1.bf16.msra.mxu0 %v434_v9  ;;  %v468_v17 = vpack.c.bf16 %v33_v14, %v30_v12  ;;  %v438_v18 = vpack.c.bf16 %v31_v16, %v28_v15  ;;  %v35_v19 = vld [vmem:[%s737_s1 + $0x68] sm:$0xff]  ;;  %v38_v20 = vld [vmem:[%s737_s1 + $0x80] sm:$0xff]  ;;  %v36_v21 = vld [vmem:[%s737_s1 + $0x70] sm:$0xff]  ;;  %v626_v54 = vsub.s32 %v99_v44, %v605_v43 }
   0x6   :  { %467 = vmatpush3.bf16.msra.mxu1 %v464_v8  ;;  %437 = vmatprep.subr.bf16.mxu0 %v436_v13  ;;  %v440_v22 = vpack.c.bf16 %v38_v20, %v35_v19  ;;  %v39_v23 = vld [vmem:[%s737_s1 + $0x88] sm:$0xff]  ;;  %v34_v24 = vld [vmem:[%s737_s1 + $0x60] sm:$0xff]  ;;  %v37_v25 = vld [vmem:[%s737_s1 + $0x78] sm:$0xff] }
   0x7   :  { %469 = vmatprep.subr.bf16.mxu1 %v468_v17  ;;  %v472_v26 = vpack.c.bf16 %v39_v23, %v36_v21  ;;  %v41_v27 = vld [vmem:[%s737_s1 + $0x98] sm:$0xff]  ;;  %v44_v28 = vld [vmem:[%s737_s1 + $0xb0] sm:$0xff]  ;;  %v42_v29 = vld [vmem:[%s737_s1 + $0xa0] sm:$0xff]  ;;  %v442_v34 = vpack.c.bf16 %v37_v25, %v34_v24 }
   0x8   :  { %v45_v30 = vld [vmem:[%s737_s1 + $0xb8] sm:$0xff]  ;;  %v444_v35 = vpack.c.bf16 %v44_v28, %v41_v27  ;;  %v40_v36 = vld [vmem:[%s737_s1 + $0x90] sm:$0xff]  ;;  %v43_v37 = vld [vmem:[%s737_s1 + $0xa8] sm:$0xff] }
   0x9   :  { %439 = vmatpush1.bf16.msra.mxu0 %v438_v18  ;;  %v476_v38 = vpack.c.bf16 %v45_v30, %v42_v29  ;;  %v47_v39 = vld [vmem:[%s737_s1 + $0xc8] sm:$0xff]  ;;  %v50_v40 = vld [vmem:[%s737_s1 + $0xe0] sm:$0xff]  ;;  %v48_v41 = vld [vmem:[%s737_s1 + $0xd0] sm:$0xff]  ;;  %v446_v45 = vpack.c.bf16 %v43_v37, %v40_v36  ;;  %v78_v36 = vsub.s32 1, %v605_v43  ;;  %v82_v37 = vsub.s32 2, %v605_v43 }
   0xa   :  { %471 = vmatpush3.bf16.msra.mxu1 %v468_v17  ;;  %441 = vmatprep.subr.bf16.mxu0 %v440_v22  ;;  %v51_v42 = vld [vmem:[%s737_s1 + $0xe8] sm:$0xff]  ;;  %v448_v46 = vpack.c.bf16 %v50_v40, %v47_v39  ;;  %v46_v47 = vld [vmem:[%s737_s1 + $0xc0] sm:$0xff]  ;;  %v49_v48 = vld [vmem:[%s737_s1 + $0xd8] sm:$0xff] }
   0xb   :  { %473 = vmatprep.subr.bf16.mxu1 %v472_v26  ;;  %v480_v49 = vpack.c.bf16 %v51_v42, %v48_v41  ;;  %v53_v50 = vld [vmem:[%s737_s1 + $0xf8] sm:$0xff]  ;;  %v56_v51 = vld [vmem:[%s737_s1 + $0x110] sm:$0xff]  ;;  %v54_v52 = vld [vmem:[%s737_s1 + $0x100] sm:$0xff]  ;;  %v450_v55 = vpack.c.bf16 %v49_v48, %v46_v47 }
   0xc   :  { %v57_v53 = vld [vmem:[%s737_s1 + $0x118] sm:$0xff]  ;;  %v14_v56 = vld [vmem:[%s738_s0] sm:$0x3]  ;;  %v15_v57 = vld [vmem:[%s738_s0 + $0x2] sm:$0x3]  ;;  %v452_v59 = vpack.c.bf16 %v56_v51, %v53_v50 }
   0xd   :  { %443 = vmatpush1.bf16.msra.mxu0 %v442_v34  ;;  %v16_v58 = vld [vmem:[%s738_s0 + $0x4] sm:$0x3]  ;;  %v52_v60 = vld [vmem:[%s737_s1 + $0xf0] sm:$0xff]  ;;  %v55_v61 = vld [vmem:[%s737_s1 + $0x108] sm:$0xff]  ;;  %v95_v63 = vcombine.low %v14_v56, %v15_v57  ;;  %v484_v0 = vpack.c.bf16 %v57_v53, %v54_v52  ;;  %v74_v34 = vsub.s32 0, %v605_v43 }
   0xe   :  { %475 = vmatpush3.bf16.msra.mxu1 %v472_v26  ;;  %445 = vmatprep.subr.bf16.mxu0 %v444_v35  ;;  %v17_v62 = vld [vmem:[%s738_s0 + $0x6] sm:$0x3]  ;;  %v59_v1 = vld [vmem:[%s737_s1 + $0x128] sm:$0xff]  ;;  %v60_v5 = vld [vmem:[%s737_s1 + $0x130] sm:$0xff]  ;;  %v454_v8 = vpack.c.bf16 %v55_v61, %v52_v60 }
   0xf   :  { %477 = vmatprep.subr.bf16.mxu1 %v476_v38  ;;  %v62_v2 = vld [vmem:[%s737_s1 + $0x140] sm:$0xff]  ;;  %v96_v4 = vcombine.low %v16_v58, %v17_v62  ;;  %v63_v6 = vld [vmem:[%s737_s1 + $0x148] sm:$0xff]  ;;  %v103_v7 = vrot.slane %v95_v63, %v626_v54  ;;  %v61_v10 = vld [vmem:[%s737_s1 + $0x138] sm:$0xff] }
  0x10   :  { %v58_v9 = vld [vmem:[%s737_s1 + $0x120] sm:$0xff]  ;;  %v18_v12 = vld [vmem:[%s738_s0 + $0x8] sm:$0x3]  ;;  %v456_v13 = vpack.c.bf16 %v62_v2, %v59_v1  ;;  %v19_v14 = vld [vmem:[%s738_s0 + $0xa] sm:$0x3]  ;;  %v488_v17 = vpack.c.bf16 %v63_v6, %v60_v5 }
  0x11   :  { %447 = vmatpush1.bf16.msra.mxu0 %v446_v45  ;;  %v110_v11 = vrot.slane %v96_v4, %v626_v54  ;;  %v20_v15 = vld [vmem:[%s738_s0 + $0xc] sm:$0x3]  ;;  %v21_v16 = vld [vmem:[%s738_s0 + $0xe] sm:$0x3]  ;;  %v65_v18 = vld [vmem:[%s737_s1 + $0x158] sm:$0xff]  ;;  %v458_v23 = vpack.c.bf16 %v61_v10, %v58_v9  ;;  %v112_v24 = vcombine.low %v18_v12, %v19_v14 }
  0x12   :  { %479 = vmatpush3.bf16.msra.mxu1 %v476_v38  ;;  %449 = vmatprep.subr.bf16.mxu0 %v448_v46  ;;  %v68_v19 = vld [vmem:[%s737_s1 + $0x170] sm:$0xff]  ;;  %v66_v21 = vld [vmem:[%s737_s1 + $0x160] sm:$0xff]  ;;  %v69_v22 = vld [vmem:[%s737_s1 + $0x178] sm:$0xff]  ;;  %v113_v25 = vcombine.low %v20_v15, %v21_v16 }
  0x13   :  { %481 = vmatprep.subr.bf16.mxu1 %v480_v49  ;;  %v111_v20 = vcombine.low %v103_v7, %v110_v11  ;;  %v460_v26 = vpack.c.bf16 %v68_v19, %v65_v18  ;;  %v64_v27 = vld [vmem:[%s737_s1 + $0x150] sm:$0xff]  ;;  %v67_v28 = vld [vmem:[%s737_s1 + $0x168] sm:$0xff]  ;;  %v492_v29 = vpack.c.bf16 %v69_v22, %v66_v21  ;;  %v120_v31 = vrot.slane %v112_v24, %v626_v54  ;;  %v70_v35 = vld [vmem:[%s739_s2] sm:$0x7] }
  0x14   :  { %v462_v30 = vpack.c.bf16 %v67_v28, %v64_v27  ;;  %v127_v32 = vrot.slane %v113_v25, %v626_v54  ;;  %v75_v38 = vrot.slane %v70_v35, %v74_v34  ;;  %v79_v39 = vrot.slane %v70_v35, %v78_v36 }
  0x15   :  { %451 = vmatpush1.bf16.msra.mxu0 %v450_v55  ;;  %429 = vmatprep.mubr.f32.mxu1 %v111_v20  ;;  %v83_v40 = vrot.slane %v70_v35, %v82_v37 }
  0x16   :  { %483 = vmatpush3.bf16.msra.mxu1 %v480_v49  ;;  %453 = vmatprep.subr.bf16.mxu0 %v452_v59  ;;  %v128_v33 = vcombine.low %v120_v31, %v127_v32 }
  0x17   :  { %485 = vmatprep.subr.bf16.mxu1 %v484_v0 }
  0x19   :  { %455 = vmatpush1.bf16.msra.mxu0 %v454_v8 }
  0x1a   :  { %487 = vmatpush3.bf16.msra.mxu1 %v484_v0  ;;  %457 = vmatprep.subr.bf16.mxu0 %v456_v13 }
  0x1b   :  { %489 = vmatprep.subr.bf16.mxu1 %v488_v17 }
  0x1d   :  { %459 = vmatpush1.bf16.msra.mxu0 %v458_v23 }
  0x1e   :  { %491 = vmatpush3.bf16.msra.mxu1 %v488_v17  ;;  %461 = vmatprep.subr.bf16.mxu0 %v460_v26 }
  0x1f   :  { %493 = vmatprep.subr.bf16.mxu1 %v492_v29 }
  0x21   :  { %463 = vmatpush1.bf16.msra.mxu0 %v462_v30 }
  0x22   :  { %495 = vmatpush3.bf16.msra.mxu1 %v492_v29 }
  0x24   :  { %196 = vmatmul.mubr.f32.vlgmr.msra.gmra.mrb[0].mxu0 %v111_v20 }
  0x25   :  { %430 = vmatmul.mubr.f32.vlgmr.msra.gmra.mrb[0].mxu1 %v128_v33  ;;  %201 = vmatprep.mubr.f32.mxu0 %v498_v3 }
  0x28   :  { %202 = vmatmul.mubr.f32.gmra.mrb[2].mxu0 %v128_v33 }
  0xf7   :  { %v197_v41 = vpop.f32.mrb[0].mxu0 }
  0xf8   :  { %v198_v42 = vadd.f32 %v197_v41, %v75_v38  ;;  %v431_v44 = vpop.f32.mrb[0].mxu1  ;;  %v199_v45 = vpop.f32.mrb[1].mxu0 }
  0xf9   :  { %v280_v46 = vadd.f32 %v431_v44, %v83_v40  ;;  %v200_v3 = vadd.f32 %v199_v45, %v79_v39  ;;  %v274_v47 = vpop.f32.mrb[1].mxu1 }
  0xfa   :  { %v275_v48 = vadd.f32 %v274_v47, %v83_v40 }
  0xfb   :  { %v326_v49 = vcombine.high %v280_v46, %v280_v46  ;;  %v289_v50 = vcombine.low %v198_v42, %v200_v3  ;;  %v290_v51 = vcombine.high %v198_v42, %v200_v3  ;;  %v203_v52 = vpop.f32.mrb[2].mxu0  ;;  %v347_v5 = vrot.slane %v280_v46, %v626_v54 }
  0xfc   :  { %v291_v53 = vcombine.high %v275_v48, %v275_v48  ;;  %v312_v55 = vrot.slane %v275_v48, %v626_v54  ;;  %v204_v56 = vadd.f32 %v203_v52, %v75_v38  ;;  %v205_v43 = vpop.f32.mrb[3].mxu0 }
  0xfd   :  { %v298_v57 = vrot.slane %v289_v50, %v626_v54  ;;  %v305_v58 = vrot.slane %v290_v51, %v626_v54  ;;  %v206_v59 = vadd.f32 %v205_v43, %v79_v39  ;;  %v354_v60 = vrot.slane %v326_v49, %v626_v54 }
  0xfe   :  { %v319_v61 = vrot.slane %v291_v53, %v626_v54 }
  0xff   :  { %v320_v62 = vcombine.low %v298_v57, %v312_v55  ;;  %v321_v63 = vcombine.high %v298_v57, %v312_v55  ;;  %v324_v0 = vcombine.low %v204_v56, %v206_v59  ;;  %v325_v1 = vcombine.high %v204_v56, %v206_v59 }
 0x100   :  { %v322_v2 = vcombine.low %v305_v58, %v319_v61  ;;  %v323_v4 = vcombine.high %v305_v58, %v319_v61 }
 0x101   :  { %367 = vst [vmem:[%s740_s3] sm:$0x3f] %v320_v62  ;;  %368 = vst [vmem:[%s740_s3 + $0x6] sm:$0x3f] %v321_v63  ;;  %v333_v6 = vrot.slane %v324_v0, %v626_v54  ;;  %v340_v7 = vrot.slane %v325_v1, %v626_v54 }
 0x102   :  { %369 = vst [vmem:[%s740_s3 + $0xc] sm:$0x3f] %v322_v2  ;;  %370 = vst [vmem:[%s740_s3 + $0x12] sm:$0x3f] %v323_v4 }
 0x103   :  { %v355_v8 = vcombine.low %v333_v6, %v347_v5  ;;  %v356_v9 = vcombine.high %v333_v6, %v347_v5  ;;  %v357_v10 = vcombine.low %v340_v7, %v354_v60  ;;  %v358_v11 = vcombine.high %v340_v7, %v354_v60 }
 0x105   :  { %371 = vst [vmem:[%s740_s3 + $0x18] sm:$0x3f] %v355_v8  ;;  %372 = vst [vmem:[%s740_s3 + $0x1e] sm:$0x3f] %v356_v9 }
 0x106   :  { %373 = vst [vmem:[%s740_s3 + $0x24] sm:$0x3f] %v357_v10  ;;  %374 = vst [vmem:[%s740_s3 + $0x2a] sm:$0x3f] %v358_v11 }

</bundles_post_ra>
